<compile_context>
chip_gen: v7x
topology: tpu7x:2x2x1
jax: 0.10.0
libtpu: 0.0.40
codegen_flags: <defaults>
</compile_context>

<pallas_src>
import math

import jax
import jax.numpy as jnp
from jax.experimental import pallas as pl
from jax.experimental.pallas import tpu as pltpu

HASH_SIZE = 128
_SUBLANE = 8     # f32 sublane multiple
_LANE = 128      # lane width


def _round_up(n, m):
    return ((n + m - 1) // m) * m


def _binarize(pre):
    # 0.5*(sign(x-0.5)+1) == (x > 0.5) everywhere except exactly x == 0.5
    # (measure-zero tie); a single compare+select is far less VPU work.
    return jnp.where(pre > 0.5, 1.0, 0.0).astype(jnp.float32)


# ------------------- one-time, tiled memory-hash precompute ------------------

def _memory_hash_kernel(mem_ref, w_ref, b_ref, hm_ref, acc_ref):
    k = pl.program_id(1)

    @pl.when(k == 0)
    def _init():
        # Bias folded into the accumulator init (saves an epilogue add).
        acc_ref[...] = jnp.broadcast_to(b_ref[...], acc_ref.shape)

    acc_ref[...] += jnp.dot(mem_ref[...], w_ref[...],
                            preferred_element_type=jnp.float32)

    @pl.when(k == pl.num_programs(1) - 1)
    def _finalize():
        hm_ref[...] = _binarize(acc_ref[...])


def precompute_memory_tables(memory, W, bias, *, m_tile=None, f_tile=None):
    """Hash the memory bank once (depends only on parameters, not on x).

    Returns (hm_t, hm_sum):
      hm_t   : (H, Mp) bf16 transposed binary codes ({0,1} exact in bf16),
               M padded to a 128-lane multiple.
      hm_sum : (1, Mp) f32 per-row popcounts; padded columns hold a sentinel
               (4*H) so they can never win the argmin.
    """
    M, F = memory.shape
    Hs = W.shape[0]

    Fp = _round_up(F, _LANE)
    if f_tile is None:
        f_tile = next(t for t in (1024, 512, 256, 128) if Fp % t == 0)
    Mp8 = _round_up(M, _SUBLANE)
    if m_tile is None:
        m_tile = min(256, Mp8)
    Mg = _round_up(Mp8, m_tile)

    # Zero padding is exact: padded F columns contribute 0 to the dot and
    # padded M rows are dropped below.  Precompute stays f32 (one-time cost,
    # threshold-sensitive) so memory codes match the reference bit-for-bit.
    mem_p = jnp.zeros((Mg, Fp), jnp.float32).at[:M, :F].set(
        memory.astype(jnp.float32))
    w_p = jnp.zeros((Fp, Hs), jnp.float32).at[:F, :].set(
        W.T.astype(jnp.float32))
    bias2 = bias.reshape(1, Hs).astype(jnp.float32)

    hm = pl.pallas_call(
        _memory_hash_kernel,
        out_shape=jax.ShapeDtypeStruct((Mg, Hs), jnp.float32),
        grid=(Mg // m_tile, Fp // f_tile),
        in_specs=[
            pl.BlockSpec((m_tile, f_tile), lambda i, k: (i, k)),
            pl.BlockSpec((f_tile, Hs), lambda i, k: (k, 0)),
            pl.BlockSpec((1, Hs), lambda i, k: (0, 0)),
        ],
        out_specs=pl.BlockSpec((m_tile, Hs), lambda i, k: (i, 0)),
        scratch_shapes=[pltpu.VMEM((m_tile, Hs), jnp.float32)],
        compiler_params=pltpu.CompilerParams(
            dimension_semantics=("parallel", "arbitrary")),
    )(mem_p, w_p, bias2)

    hm = hm[:M]                                   # drop M padding rows
    Mp = _round_up(M, _LANE)
    sentinel = jnp.float32(4 * Hs)                # > max true Hamming distance
    # bf16 is exact on {0,1}; the Hamming cross-term rides the bf16 MXU path.
    # TODO(synk): int8 codes on v5e/v6e (2x MXU rate) / fp8 e4m3 on v7x.
    hm_t = jnp.zeros((Hs, Mp), jnp.bfloat16).at[:, :M].set(
        hm.T.astype(jnp.bfloat16))
    hm_sum = jnp.full((1, Mp), sentinel, jnp.float32).at[:, :M].set(
        jnp.sum(hm, axis=1)[None, :])
    return hm_t, hm_sum


# -------------- per-call: hash features + fused Hamming argmin ---------------

def _hash_match_kernel(feat_ref, w_ref, b_ref, hmT_ref, hmsum_ref,
                       idx_ref, acc_ref):
    k = pl.program_id(1)

    @pl.when(k == 0)
    def _init():
        acc_ref[...] = jnp.broadcast_to(b_ref[...], acc_ref.shape)

    # Accumulate the feature-hash pre-activation over F tiles (bf16 MXU,
    # f32 accumulation).
    acc_ref[...] += jnp.dot(feat_ref[...], w_ref[...],
                            preferred_element_type=jnp.float32)

    @pl.when(k == pl.num_programs(1) - 1)
    def _finalize():
        hf = _binarize(acc_ref[...])                          # (TB, H) {0,1}
        hf_sum = jnp.sum(hf, axis=1, keepdims=True)           # (TB, 1)
        # Hamming distance via |a-b| = a + b - 2ab on {0,1} codes: one bf16
        # MXU matmul + cheap row sums; all quantities are small exact ints.
        cross = jnp.dot(hf.astype(jnp.bfloat16), hmT_ref[...],
                        preferred_element_type=jnp.float32)   # (TB, Mp)
        hd = hf_sum + hmsum_ref[...] - 2.0 * cross            # (TB, Mp)

        # Fused min+argmin in a single lane reduction: encode hd*S + col with
        # S = next_pow2(Mp).  Exact in f32 (bound checked in the wrapper);
        # ties break to the smallest column = first occurrence (torch.argmin).
        mp = hd.shape[-1]
        s = 1 << (mp - 1).bit_length()
        col = jax.lax.broadcasted_iota(jnp.int32, hd.shape, 1).astype(
            jnp.float32)
        enc = hd * jnp.float32(s) + col
        enc_min = jnp.min(enc, axis=1, keepdims=True)         # (TB, 1)
        idx = jnp.bitwise_and(enc_min.astype(jnp.int32), s - 1)
        # Lane-broadcast so the output store is lane-dense / unmasked.
        idx_ref[...] = jnp.broadcast_to(idx, idx_ref.shape)


# ------------- per-call: batched DMA-gather of the selected rows -------------

def _gather_kernel(idx_ref, mem_ref, out_ref, sem):
    i = pl.program_id(0)
    g_rows = out_ref.shape[0]
    # G row DMAs per grid step, started together then drained; the memory bank
    # never leaves HBM except for the B selected rows (O(B*F) traffic).
    for g in range(g_rows):
        row = idx_ref[i * g_rows + g]
        pltpu.make_async_copy(mem_ref.at[pl.ds(row, 1), :],
                              out_ref.at[pl.ds(g, 1), :],
                              sem.at[g]).start()
    for g in range(g_rows):
        row = idx_ref[i * g_rows + g]
        pltpu.make_async_copy(mem_ref.at[pl.ds(row, 1), :],
                              out_ref.at[pl.ds(g, 1), :],
                              sem.at[g]).wait()


# --------------------------------- wrapper -----------------------------------

def hash_coding_forward(x, memory, W, bias, tables=None, *,
                        exact_f32=False, f_tile=None, gather_group=8):
    """Forward pass of HashCodingLayer.

    x: (B, C, H, W); memory: (M, F); W: (128, F) nn.Linear weight; bias: (128,).
    tables: optional precomputed (hm_t, hm_sum) from precompute_memory_tables.
    """
    b, c, h, w = x.shape
    F = c * h * w
    M, Fm = memory.shape
    Hs = W.shape[0]
    assert Fm == F and W.shape[1] == F and bias.shape == (Hs,)

    if tables is None:
        tables = precompute_memory_tables(memory, W, bias)
    hm_t, hm_sum = tables
    Mp = hm_t.shape[1]

    # Exactness bound for the fused argmin encode (hd_max = Hs + sentinel).
    s_enc = 1 << (Mp - 1).bit_length()
    assert (5 * Hs + 1) * s_enc <= (1 << 24), \
        "memory_size too large for the fused argmin encode"
    # TODO(synk): for very large M (v7x's 64 MiB VMEM), add an M-tile grid axis
    # with a running min/argmin carry instead of holding the whole (TB, Mp) row.

    compute_dtype = jnp.float32 if exact_f32 else jnp.bfloat16

    # Batch tile: MXU/lane width when the batch is big enough (amortizes the
    # W^T stream, fills the MXU, and gives >=2 'parallel' tiles for v7x's two
    # TensorCores once B >= 256); otherwise just the sublane-rounded batch.
    TB = min(_LANE, _round_up(b, _SUBLANE))
    Bp = _round_up(b, TB)

    # Reduction tile over F: pad F to a lane multiple and pick the largest of
    # {1024,512,256,128} that divides it (zero-padded columns add 0 exactly).
    Fp = _round_up(F, _LANE)
    if f_tile is None:
        f_tile = next(t for t in (1024, 512, 256, 128) if Fp % t == 0)
    nk = Fp // f_tile

    # TODO(synk): for very large B*F, mask the tail batch tile in-kernel
    # instead of materializing this padded copy of the features.
    feat = x.reshape(b, F).astype(compute_dtype)
    if Bp != b or Fp != F:
        feat = jnp.zeros((Bp, Fp), compute_dtype).at[:b, :F].set(feat)
    if Fp != F:
        w_t = jnp.zeros((Fp, Hs), compute_dtype).at[:F, :].set(
            W.T.astype(compute_dtype))
    else:
        w_t = W.T.astype(compute_dtype)
    bias2 = bias.reshape(1, Hs).astype(jnp.float32)

    idx = pl.pallas_call(
        _hash_match_kernel,
        out_shape=jax.ShapeDtypeStruct((Bp, _LANE), jnp.int32),
        grid=(Bp // TB, nk),
        in_specs=[
            pl.BlockSpec((TB, f_tile), lambda i, k: (i, k)),   # feature tile
            pl.BlockSpec((f_tile, Hs), lambda i, k: (k, 0)),   # W^T (reduction)
            pl.BlockSpec((1, Hs), lambda i, k: (0, 0)),        # bias (resident)
            pl.BlockSpec((Hs, Mp), lambda i, k: (0, 0)),       # code table
            pl.BlockSpec((1, Mp), lambda i, k: (0, 0)),        # code popcounts
        ],
        out_specs=pl.BlockSpec((TB, _LANE), lambda i, k: (i, 0)),
        scratch_shapes=[pltpu.VMEM((TB, Hs), jnp.float32)],    # pre-act acc
        compiler_params=pltpu.CompilerParams(
            dimension_semantics=("parallel", "arbitrary")),
    )(feat, w_t, bias2, hm_t, hm_sum)

    idx_flat = idx[:b, 0]                                      # (B,) int32

    # Batched data-dependent gather: G manual row DMAs per grid step from the
    # HBM-resident memory bank straight into the output block.
    G = gather_group
    Bg = _round_up(b, G)
    idx_pad = jnp.zeros((Bg,), jnp.int32).at[:b].set(idx_flat)  # pad w/ valid 0

    out = pl.pallas_call(
        _gather_kernel,
        out_shape=jax.ShapeDtypeStruct((Bg, F), memory.dtype),
        grid_spec=pltpu.PrefetchScalarGridSpec(
            num_scalar_prefetch=1,
            grid=(Bg // G,),
            in_specs=[pl.BlockSpec(memory_space=pl.ANY)],       # stays in HBM
            out_specs=pl.BlockSpec((G, F), lambda i, idx_ref: (i, 0)),
            scratch_shapes=[pltpu.SemaphoreType.DMA((G,))],
        ),
        compiler_params=pltpu.CompilerParams(
            dimension_semantics=("arbitrary",)),
    )(idx_pad, memory)

    return out[:b].reshape(b, c, h, w)


# --------------------------------- reference ----------------------------------

def reference_forward(x, memory, W, bias):
    """Pure-JAX reference mirroring the PyTorch module (f32, sign-based)."""
    b, c, h, w = x.shape
    feat = x.reshape(b, -1).astype(jnp.float32)
    hm = 0.5 * (jnp.sign(memory @ W.T + bias - 0.5) + 1.0)
    hf = 0.5 * (jnp.sign(feat @ W.T + bias - 0.5) + 1.0)
    hd = jnp.sum(jnp.abs(hm[None, :, :] - hf[:, None, :]), axis=-1)
    idx = jnp.argmin(hd, axis=1)
    return memory[idx].reshape(b, c, h, w)


if __name__ == "__main__":
    B, C, Hdim, Wdim = 2, 4, 16, 16
    feature_size = C * Hdim * Wdim          # 1024
    memory_size = 64
    hash_size = HASH_SIZE                   # 128, fixed by the module

    key = jax.random.PRNGKey(0)
    k_mem, k_w, k_b, k_noise = jax.random.split(key, 4)

    stdv = 1.0 / math.sqrt(feature_size)
    # Standard-normal memory rows give diverse, non-trivial hash codes; the
    # Linear weight/bias follow the module's default uniform(-stdv, stdv) init.
    memory = jax.random.normal(k_mem, (memory_size, feature_size),
                               dtype=jnp.float32)
    W = jax.random.uniform(k_w, (hash_size, feature_size),
                           minval=-stdv, maxval=stdv, dtype=jnp.float32)
    bias = jax.random.uniform(k_b, (hash_size,),
                              minval=-stdv, maxval=stdv, dtype=jnp.float32)

    # Inputs are noisy copies of memory rows 3 and 17, so the nearest hash code
    # has a wide argmin margin and kernel/reference must retrieve the same rows
    # (robust to the bf16 feature-hash path flipping the odd near-threshold bit).
    x = (memory[jnp.array([3, 17])]
         + 0.01 * jax.random.normal(k_noise, (B, feature_size),
                                    dtype=jnp.float32)
         ).reshape(B, C, Hdim, Wdim)

    tables = precompute_memory_tables(memory, W, bias)   # one-time, hoisted
    out = hash_coding_forward(x, memory, W, bias, tables)
    out = jax.block_until_ready(out)

    ref = reference_forward(x, memory, W, bias)
    assert out.shape == (B, C, Hdim, Wdim)
    assert jnp.allclose(out, ref, atol=1e-6, rtol=1e-6), "mismatch vs reference"

    print("KERNEL_OK")
</pallas_src>

<mosaic_0001>
module attributes {stable_mosaic.version = 11 : i64} {
  func.func @_memory_hash_kernel(%arg0: i32, %arg1: i32, %arg2: memref<64x1024xf32, #tpu.memory_space<vmem>>, %arg3: memref<1024x128xf32, #tpu.memory_space<vmem>>, %arg4: memref<1x128xf32, #tpu.memory_space<vmem>>, %arg5: memref<64x128xf32, #tpu.memory_space<vmem>>, %arg6: memref<64x128xf32, #tpu.memory_space<vmem>>) attributes {dimension_semantics = [#tpu.dimension_semantics<parallel>, #tpu.dimension_semantics<arbitrary>], iteration_bounds = array<i64: 1, 1>, scalar_prefetch = 0 : i64, scratch_operands = 1 : i64, tpu.core_type = #tpu.core_type<tc>, window_params = [{transform_indices = @transform_0, window_bounds = array<i64: 64, 1024>}, {transform_indices = @transform_1, window_bounds = array<i64: 1024, 128>}, {pipeline_mode = #tpu.pipeline_mode<synchronous>, transform_indices = @transform_2, window_bounds = array<i64: 1, 128>}, {transform_indices = @transform_3, window_bounds = array<i64: 64, 128>}]} {
    %c0_i32 = arith.constant 0 : i32
    %0 = arith.cmpi eq, %arg1, %c0_i32 : i32
    %1 = arith.extui %0 : i1 to i32
    %c0_i32_0 = arith.constant 0 : i32
    %2 = arith.cmpi ne, %1, %c0_i32_0 : i32
    scf.if %2 {
      %c0_10 = arith.constant 0 : index
      %c0_11 = arith.constant 0 : index
      %12 = vector.load %arg4[%c0_10, %c0_11] : memref<1x128xf32, #tpu.memory_space<vmem>>, vector<1x128xf32>
      %13 = vector.shape_cast %12 : vector<1x128xf32> to vector<1x128xf32>
      %14 = vector.broadcast %13 : vector<1x128xf32> to vector<64x128xf32>
      %c0_12 = arith.constant 0 : index
      %c0_13 = arith.constant 0 : index
      %15 = vector.load %arg6[%c0_12, %c0_13] : memref<64x128xf32, #tpu.memory_space<vmem>>, vector<64x128xf32>
      tpu.vector_store %arg6[%c0_12, %c0_13], %14 {strides = array<i32>} : memref<64x128xf32, #tpu.memory_space<vmem>>, vector<64x128xf32>,
    } else {
    }
    %c0 = arith.constant 0 : index
    %c0_1 = arith.constant 0 : index
    %3 = vector.load %arg6[%c0, %c0_1] : memref<64x128xf32, #tpu.memory_space<vmem>>, vector<64x128xf32>
    %c0_2 = arith.constant 0 : index
    %c0_3 = arith.constant 0 : index
    %4 = vector.load %arg2[%c0_2, %c0_3] : memref<64x1024xf32, #tpu.memory_space<vmem>>, vector<64x1024xf32>
    %c0_4 = arith.constant 0 : index
    %c0_5 = arith.constant 0 : index
    %5 = vector.load %arg3[%c0_4, %c0_5] : memref<1024x128xf32, #tpu.memory_space<vmem>>, vector<1024x128xf32>
    %cst = arith.constant dense<0.000000e+00> : vector<64x128xf32>
    %6 = tpu.matmul %4, %5, %cst {dimension_numbers = #tpu.dot_dimension_numbers<[1], [0], [0], [1], [0, 0, 1, 1], [], []>} : vector<64x1024xf32>, vector<1024x128xf32>, vector<64x128xf32> -> vector<64x128xf32>
    %7 = arith.addf %3, %6 : vector<64x128xf32>
    %c0_6 = arith.constant 0 : index
    %c0_7 = arith.constant 0 : index
    %8 = vector.load %arg6[%c0_6, %c0_7] : memref<64x128xf32, #tpu.memory_space<vmem>>, vector<64x128xf32>
    tpu.vector_store %arg6[%c0_6, %c0_7], %7 {strides = array<i32>} : memref<64x128xf32, #tpu.memory_space<vmem>>, vector<64x128xf32>,
    %c0_i32_8 = arith.constant 0 : i32
    %9 = arith.cmpi eq, %arg1, %c0_i32_8 : i32
    %10 = arith.extui %9 : i1 to i32
    %c0_i32_9 = arith.constant 0 : i32
    %11 = arith.cmpi ne, %10, %c0_i32_9 : i32
    scf.if %11 {
      %c0_10 = arith.constant 0 : index
      %c0_11 = arith.constant 0 : index
      %12 = vector.load %arg6[%c0_10, %c0_11] : memref<64x128xf32, #tpu.memory_space<vmem>>, vector<64x128xf32>
      %cst_12 = arith.constant 5.000000e-01 : f32
      %13 = vector.broadcast %cst_12 : f32 to vector<64x128xf32>
      %14 = arith.cmpf ogt, %12, %13 : vector<64x128xf32>
      %cst_13 = arith.constant 1.000000e+00 : f32
      %cst_14 = arith.constant 0.000000e+00 : f32
      %15 = vector.broadcast %cst_13 : f32 to vector<64x128xf32>
      %16 = vector.broadcast %cst_14 : f32 to vector<64x128xf32>
      %17 = arith.select %14, %15, %16 : vector<64x128xi1>, vector<64x128xf32>
      %c0_15 = arith.constant 0 : index
      %c0_16 = arith.constant 0 : index
      %18 = vector.load %arg5[%c0_15, %c0_16] : memref<64x128xf32, #tpu.memory_space<vmem>>, vector<64x128xf32>
      tpu.vector_store %arg5[%c0_15, %c0_16], %17 {strides = array<i32>} : memref<64x128xf32, #tpu.memory_space<vmem>>, vector<64x128xf32>,
    } else {
    }
    return
  }
  func.func @transform_0(%arg0: i32, %arg1: i32) -> (i32, i32) {
    %c0_i32 = arith.constant 0 : i32
    return %arg0, %arg1 : i32, i32
  }
  func.func @transform_1(%arg0: i32, %arg1: i32) -> (i32, i32) {
    %c0_i32 = arith.constant 0 : i32
    %c0_i32_0 = arith.constant 0 : i32
    return %arg1, %c0_i32 : i32, i32
  }
  func.func @transform_2(%arg0: i32, %arg1: i32) -> (i32, i32) {
    %c0_i32 = arith.constant 0 : i32
    %c0_i32_0 = arith.constant 0 : i32
    %c0_i32_1 = arith.constant 0 : i32
    return %c0_i32, %c0_i32_0 : i32, i32
  }
  func.func @transform_3(%arg0: i32, %arg1: i32) -> (i32, i32) {
    %c0_i32 = arith.constant 0 : i32
    %c0_i32_0 = arith.constant 0 : i32
    return %arg0, %c0_i32 : i32, i32
  }
}

</mosaic_0001>

<bundles_post_ra>
// kernel: tpu_custom_call.1
= control target key start
LH: loop header
LB: loop body
LE: loop exit
PB: predicated region body
PF: predicated region fallthrough
CT: control target
= control target key end

     0   :  { %8 = vsyncpa [#allocation4], 0  ;;  %s1293_s0 = inlined_call_operand.hbm [shape: f32[64,1024], index: 0, kind: input, shape index: {}]   ;;  %s1294_s1 = inlined_call_operand.hbm [shape: f32[1024,128], index: 1, kind: input, shape index: {}]   ;;  %s1295_s2 = inlined_call_operand.vmem [shape: f32[1,128], index: 2, kind: input, shape index: {}]   ;;  %s1296_s3 = inlined_call_operand.hbm [shape: f32[64,128], index: 3, kind: output, shape index: {}]  }
   0x1   :  { %9 = vsyncpa [#allocation7], 0 }
   0x2   :  { %10 = vsyncpa [#allocation5], 0  ;;  %s1184_s12 = smov [#allocation3]   ;;  %s1112_s16 = scalar_lea.hbm %s1293_s0, 8192 }
   0x3   :  { %s16_s13 = sshll.u32 %s1184_s12, 4  ;;  %p1113_p0 = scmp.ne.s32.totalorder %s1293_s0, %s1112_s16  ;;  %s17_s13 = int_to_ptr.vmem [resolvable:$true] %s16_s13 }
   0x4   :  { %p1116_p1 = scmp.lt.u32.totalorder %s1112_s16, %s1293_s0 }
   0x6   :  { %p1118_p2 = pnand %p1116_p1, %p1113_p0 }
   0x8   :  { %1121 = shalt.err (!%p1118_p2)
}
   0x9   :  { %s1122_s21 = scalar_lea.vmem %s17_s13, 8192  ;;  %p1127_p4 = scmp.lt.s32.totalorder %s17_s13, %s17_s13 }
   0xa   :  { %p1123_p3 = scmp.ne.s32.totalorder %s17_s13, %s1122_s21  ;;  %p1128_p5 = scmp.lt.s32.totalorder %s1122_s21, %s1122_s21 }
   0xc   :  { %p1129_p6 = por %p1128_p5, %p1127_p4 }
   0xe   :  { %p1130_p7 = pnand %p1129_p6, %p1123_p3 }
  0x10   :  { %1133 = shalt.err (!%p1130_p7)
}
  0x11   :  { %s1185_s22 = smov 1024   ;;  %s1186_s23 = smov 64  }
  0x12   :  { %22 = dma.hbm_to_vmem [thread:$0]  %s1293_s0, 8192, %s17_s13, [#allocation4], %s1185_s22, %s1185_s22, %s1186_s23  }
  0x13   :  { %s1187_s26 = smov [#allocation6]   ;;  %s1134_s30 = scalar_lea.hbm %s1294_s1, 16384 }
  0x14   :  { %s28_s27 = sshll.u32 %s1187_s26, 4  ;;  %p1135_p8 = scmp.ne.s32.totalorder %s1294_s1, %s1134_s30  ;;  %s29_s27 = int_to_ptr.vmem [resolvable:$true] %s28_s27 }
  0x15   :  { %p1138_p9 = scmp.lt.u32.totalorder %s1134_s30, %s1294_s1 }
  0x17   :  { %p1140_p10 = pnand %p1138_p9, %p1135_p8 }
  0x19   :  { %1143 = shalt.err (!%p1140_p10)
}
  0x1a   :  { %s1144_s8 = scalar_lea.vmem %s29_s27, 16384  ;;  %p1149_p12 = scmp.lt.s32.totalorder %s29_s27, %s29_s27 }
  0x1b   :  { %p1145_p11 = scmp.ne.s32.totalorder %s29_s27, %s1144_s8  ;;  %p1150_p13 = scmp.lt.s32.totalorder %s1144_s8, %s1144_s8 }
  0x1d   :  { %p1151_p0 = por %p1150_p13, %p1149_p12 }
  0x1f   :  { %p1152_p1 = pnand %p1151_p0, %p1145_p11 }
  0x21   :  { %1155 = shalt.err (!%p1152_p1)
}
  0x22   :  { %s1188_s0 = smov 128   ;;  %s1189_s9 = smov 8  }
  0x23   :  { %34 = dma.hbm_to_vmem [thread:$0]  %s1294_s1, 16384, %s29_s27, [#allocation7], %s1188_s0, %s1188_s0, %s1189_s9  }
  0x24   :  { %1178 = dma.done.wait [#allocation4], 8192  }
  0x25   :  { %1179 = vsyncadd [#allocation4], 4294959104 }
  0x26   :  { %1180 = dma.done.wait [#allocation7], 16384  }
  0x27   :  { %1181 = vsyncadd [#allocation7], 4294950912  ;;  %v150_v0 = vld [vmem:[#allocation6 + $0x80] sm:$0xff]  ;;  %v151_v1 = vld [vmem:[#allocation6 + $0x88] sm:$0xff] }
  0x28   :  { %v182_v2 = vld [vmem:[#allocation6 + $0x180] sm:$0xff]  ;;  %v976_v3 = vpack.c.bf16 %v151_v1, %v150_v0  ;;  %v183_v4 = vld [vmem:[#allocation6 + $0x188] sm:$0xff]  ;;  %v152_v11 = vld [vmem:[#allocation6 + $0x90] sm:$0xff] }
  0x29   :  { %v134_v5 = vld [vmem:[#allocation6] sm:$0xff]  ;;  %v135_v6 = vld [vmem:[#allocation6 + $0x8] sm:$0xff]  ;;  %v1008_v7 = vpack.c.bf16 %v183_v4, %v182_v2  ;;  %v153_v13 = vld [vmem:[#allocation6 + $0x98] sm:$0xff] }
  0x2a   :  { %v978_v8 = vpack.c.bf16 %v135_v6, %v134_v5  ;;  %v166_v9 = vld [vmem:[#allocation6 + $0x100] sm:$0xff]  ;;  %v167_v10 = vld [vmem:[#allocation6 + $0x108] sm:$0xff]  ;;  %977 = vmatprep.subr.bf16.mxu0 %v976_v3  ;;  %v184_v14 = vld [vmem:[#allocation6 + $0x190] sm:$0xff]  ;;  %v980_v16 = vpack.c.bf16 %v153_v13, %v152_v11 }
  0x2b   :  { %v1010_v12 = vpack.c.bf16 %v167_v10, %v166_v9  ;;  %v185_v15 = vld [vmem:[#allocation6 + $0x198] sm:$0xff]  ;;  %1009 = vmatprep.subr.bf16.mxu1 %v1008_v7  ;;  %v136_v18 = vld [vmem:[#allocation6 + $0x10] sm:$0xff]  ;;  %v154_v23 = vld [vmem:[#allocation6 + $0xa0] sm:$0xff] }
  0x2c   :  { %979 = vmatpush3.bf16.msra.mxu0 %v978_v8  ;;  %v1012_v17 = vpack.c.bf16 %v185_v15, %v184_v14  ;;  %v137_v19 = vld [vmem:[#allocation6 + $0x18] sm:$0xff]  ;;  %v168_v20 = vld [vmem:[#allocation6 + $0x110] sm:$0xff]  ;;  %v155_v24 = vld [vmem:[#allocation6 + $0xa8] sm:$0xff] }
  0x2d   :  { %1011 = vmatpush3.bf16.msra.mxu1 %v1010_v12  ;;  %v982_v21 = vpack.c.bf16 %v137_v19, %v136_v18  ;;  %v169_v22 = vld [vmem:[#allocation6 + $0x118] sm:$0xff]  ;;  %981 = vmatprep.subr.bf16.mxu0 %v980_v16  ;;  %v984_v26 = vpack.c.bf16 %v155_v24, %v154_v23  ;;  %v186_v27 = vld [vmem:[#allocation6 + $0x1a0] sm:$0xff]  ;;  %v187_v28 = vld [vmem:[#allocation6 + $0x1a8] sm:$0xff] }
  0x2e   :  { %1013 = vmatprep.subr.bf16.mxu1 %v1012_v17  ;;  %v1014_v25 = vpack.c.bf16 %v169_v22, %v168_v20  ;;  %v138_v29 = vld [vmem:[#allocation6 + $0x20] sm:$0xff]  ;;  %v1016_v30 = vpack.c.bf16 %v187_v28, %v186_v27  ;;  %v139_v31 = vld [vmem:[#allocation6 + $0x28] sm:$0xff]  ;;  %v156_v35 = vld [vmem:[#allocation6 + $0xb0] sm:$0xff] }
  0x2f   :  { %v170_v32 = vld [vmem:[#allocation6 + $0x120] sm:$0xff]  ;;  %v171_v33 = vld [vmem:[#allocation6 + $0x128] sm:$0xff]  ;;  %v986_v34 = vpack.c.bf16 %v139_v31, %v138_v29  ;;  %v157_v36 = vld [vmem:[#allocation6 + $0xb8] sm:$0xff] }
  0x30   :  { %983 = vmatpush3.bf16.msra.mxu0 %v982_v21  ;;  %v188_v37 = vld [vmem:[#allocation6 + $0x1b0] sm:$0xff]  ;;  %v1018_v38 = vpack.c.bf16 %v171_v33, %v170_v32  ;;  %v988_v39 = vpack.c.bf16 %v157_v36, %v156_v35  ;;  %v189_v40 = vld [vmem:[#allocation6 + $0x1b8] sm:$0xff]  ;;  %v158_v46 = vld [vmem:[#allocation6 + $0xc0] sm:$0xff] }
  0x31   :  { %1015 = vmatpush3.bf16.msra.mxu1 %v1014_v25  ;;  %985 = vmatprep.subr.bf16.mxu0 %v984_v26  ;;  %v140_v41 = vld [vmem:[#allocation6 + $0x30] sm:$0xff]  ;;  %v141_v42 = vld [vmem:[#allocation6 + $0x38] sm:$0xff]  ;;  %v1020_v43 = vpack.c.bf16 %v189_v40, %v188_v37  ;;  %v159_v47 = vld [vmem:[#allocation6 + $0xc8] sm:$0xff] }
  0x32   :  { %1017 = vmatprep.subr.bf16.mxu1 %v1016_v30  ;;  %v172_v44 = vld [vmem:[#allocation6 + $0x130] sm:$0xff]  ;;  %v173_v45 = vld [vmem:[#allocation6 + $0x138] sm:$0xff]  ;;  %v190_v48 = vld [vmem:[#allocation6 + $0x1c0] sm:$0xff]  ;;  %v990_v50 = vpack.c.bf16 %v141_v42, %v140_v41  ;;  %v992_v52 = vpack.c.bf16 %v159_v47, %v158_v46 }
  0x33   :  { %v191_v49 = vld [vmem:[#allocation6 + $0x1c8] sm:$0xff]  ;;  %v1022_v51 = vpack.c.bf16 %v173_v45, %v172_v44  ;;  %v142_v53 = vld [vmem:[#allocation6 + $0x40] sm:$0xff]  ;;  %v160_v58 = vld [vmem:[#allocation6 + $0xd0] sm:$0xff] }
  0x34   :  { %987 = vmatpush3.bf16.msra.mxu0 %v986_v34  ;;  %v143_v54 = vld [vmem:[#allocation6 + $0x48] sm:$0xff]  ;;  %v174_v55 = vld [vmem:[#allocation6 + $0x140] sm:$0xff]  ;;  %v1024_v56 = vpack.c.bf16 %v191_v49, %v190_v48  ;;  %v161_v59 = vld [vmem:[#allocation6 + $0xd8] sm:$0xff] }
  0x35   :  { %1019 = vmatpush3.bf16.msra.mxu1 %v1018_v38  ;;  %989 = vmatprep.subr.bf16.mxu0 %v988_v39  ;;  %v175_v57 = vld [vmem:[#allocation6 + $0x148] sm:$0xff]  ;;  %v192_v60 = vld [vmem:[#allocation6 + $0x1d0] sm:$0xff]  ;;  %v193_v61 = vld [vmem:[#allocation6 + $0x1d8] sm:$0xff]  ;;  %v994_v62 = vpack.c.bf16 %v143_v54, %v142_v53  ;;  %v996_v0 = vpack.c.bf16 %v161_v59, %v160_v58 }
  0x36   :  { %1021 = vmatprep.subr.bf16.mxu1 %v1020_v43  ;;  %v1026_v63 = vpack.c.bf16 %v175_v57, %v174_v55  ;;  %v144_v1 = vld [vmem:[#allocation6 + $0x50] sm:$0xff]  ;;  %v145_v2 = vld [vmem:[#allocation6 + $0x58] sm:$0xff]  ;;  %v1028_v4 = vpack.c.bf16 %v193_v61, %v192_v60  ;;  %v162_v6 = vld [vmem:[#allocation6 + $0xe0] sm:$0xff] }
  0x37   :  { %v176_v3 = vld [vmem:[#allocation6 + $0x150] sm:$0xff]  ;;  %v177_v5 = vld [vmem:[#allocation6 + $0x158] sm:$0xff]  ;;  %v163_v7 = vld [vmem:[#allocation6 + $0xe8] sm:$0xff]  ;;  %v998_v10 = vpack.c.bf16 %v145_v2, %v144_v1 }
  0x38   :  { %991 = vmatpush3.bf16.msra.mxu0 %v990_v50  ;;  %v194_v8 = vld [vmem:[#allocation6 + $0x1e0] sm:$0xff]  ;;  %v195_v9 = vld [vmem:[#allocation6 + $0x1e8] sm:$0xff]  ;;  %v1030_v13 = vpack.c.bf16 %v177_v5, %v176_v3  ;;  %v1000_v14 = vpack.c.bf16 %v163_v7, %v162_v6  ;;  %v73_v17 = vld [vmem:[#allocation3 + $0x18] sm:$0xff] }
  0x39   :  { %1023 = vmatpush3.bf16.msra.mxu1 %v1022_v51  ;;  %993 = vmatprep.subr.bf16.mxu0 %v992_v52  ;;  %v146_v11 = vld [vmem:[#allocation6 + $0x60] sm:$0xff]  ;;  %v147_v12 = vld [vmem:[#allocation6 + $0x68] sm:$0xff]  ;;  %v1032_v18 = vpack.c.bf16 %v195_v9, %v194_v8  ;;  %v164_v20 = vld [vmem:[#allocation6 + $0xf0] sm:$0xff] }
  0x3a   :  { %1025 = vmatprep.subr.bf16.mxu1 %v1024_v56  ;;  %v178_v15 = vld [vmem:[#allocation6 + $0x160] sm:$0xff]  ;;  %v71_v16 = vld [vmem:[#allocation3 + $0x8] sm:$0xff]  ;;  %v165_v21 = vld [vmem:[#allocation6 + $0xf8] sm:$0xff]  ;;  %431 = vmatprep.mubr.f32.mxu1 %v73_v17  ;;  %v1002_v24 = vpack.c.bf16 %v147_v12, %v146_v11 }
  0x3b   :  { %v179_v19 = vld [vmem:[#allocation6 + $0x168] sm:$0xff]  ;;  %326 = vmatprep.mubr.f32.mxu0 %v71_v16  ;;  %v196_v22 = vld [vmem:[#allocation6 + $0x1f0] sm:$0xff]  ;;  %v197_v23 = vld [vmem:[#allocation6 + $0x1f8] sm:$0xff]  ;;  %v1004_v26 = vpack.c.bf16 %v165_v21, %v164_v20 }
  0x3c   :  { %995 = vmatpush3.bf16.msra.mxu0 %v994_v62  ;;  %v1034_v25 = vpack.c.bf16 %v179_v19, %v178_v15  ;;  %v148_v27 = vld [vmem:[#allocation6 + $0x70] sm:$0xff]  ;;  %v149_v28 = vld [vmem:[#allocation6 + $0x78] sm:$0xff]  ;;  %v1036_v30 = vpack.c.bf16 %v197_v23, %v196_v22  ;;  %v214_v32 = vld [vmem:[#allocation6 + $0x280] sm:$0xff] }
  0x3d   :  { %1027 = vmatpush3.bf16.msra.mxu1 %v1026_v63  ;;  %997 = vmatprep.subr.bf16.mxu0 %v996_v0  ;;  %v180_v29 = vld [vmem:[#allocation6 + $0x170] sm:$0xff]  ;;  %v181_v31 = vld [vmem:[#allocation6 + $0x178] sm:$0xff]  ;;  %v215_v33 = vld [vmem:[#allocation6 + $0x288] sm:$0xff]  ;;  %v1006_v36 = vpack.c.bf16 %v149_v28, %v148_v27 }
  0x3e   :  { %1029 = vmatprep.subr.bf16.mxu1 %v1028_v4  ;;  %v246_v34 = vld [vmem:[#allocation6 + $0x380] sm:$0xff]  ;;  %v247_v35 = vld [vmem:[#allocation6 + $0x388] sm:$0xff]  ;;  %v1038_v37 = vpack.c.bf16 %v181_v31, %v180_v29  ;;  %v1040_v38 = vpack.c.bf16 %v215_v33, %v214_v32  ;;  %v216_v44 = vld [vmem:[#allocation6 + $0x290] sm:$0xff] }
  0x3f   :  { %v198_v39 = vld [vmem:[#allocation6 + $0x200] sm:$0xff]  ;;  %v199_v40 = vld [vmem:[#allocation6 + $0x208] sm:$0xff]  ;;  %v1072_v41 = vpack.c.bf16 %v247_v35, %v246_v34  ;;  %v217_v45 = vld [vmem:[#allocation6 + $0x298] sm:$0xff] }
  0x40   :  { %999 = vmatpush3.bf16.msra.mxu0 %v998_v10  ;;  %v230_v42 = vld [vmem:[#allocation6 + $0x300] sm:$0xff]  ;;  %v231_v43 = vld [vmem:[#allocation6 + $0x308] sm:$0xff]  ;;  %v1042_v47 = vpack.c.bf16 %v199_v40, %v198_v39  ;;  %v248_v48 = vld [vmem:[#allocation6 + $0x390] sm:$0xff]  ;;  %v1044_v56 = vpack.c.bf16 %v217_v45, %v216_v44 }
  0x41   :  { %1031 = vmatpush3.bf16.msra.mxu1 %v1030_v13  ;;  %1001 = vmatprep.subr.bf16.mxu0 %v1000_v14  ;;  %v70_v46 = vld [vmem:[#allocation3] sm:$0xff]  ;;  %v249_v49 = vld [vmem:[#allocation6 + $0x398] sm:$0xff]  ;;  %v72_v50 = vld [vmem:[#allocation3 + $0x10] sm:$0xff]  ;;  %v1074_v55 = vpack.c.bf16 %v231_v43, %v230_v42 }
  0x42   :  { %1033 = vmatprep.subr.bf16.mxu1 %v1032_v18  ;;  %v200_v51 = vld [vmem:[#allocation6 + $0x210] sm:$0xff]  ;;  %v201_v52 = vld [vmem:[#allocation6 + $0x218] sm:$0xff]  ;;  %v79_v53 = vld [vmem:[#allocation3 + $0x48] sm:$0xff]  ;;  %v1076_v58 = vpack.c.bf16 %v249_v49, %v248_v48 }
  0x43   :  { %v81_v54 = vld [vmem:[#allocation3 + $0x58] sm:$0xff]  ;;  %v232_v57 = vld [vmem:[#allocation6 + $0x310] sm:$0xff]  ;;  %v218_v60 = vld [vmem:[#allocation6 + $0x2a0] sm:$0xff]  ;;  %v1046_v63 = vpack.c.bf16 %v201_v52, %v200_v51 }
  0x44   :  { %1003 = vmatpush3.bf16.msra.mxu0 %v1002_v24  ;;  %v233_v59 = vld [vmem:[#allocation6 + $0x318] sm:$0xff]  ;;  %v219_v61 = vld [vmem:[#allocation6 + $0x2a8] sm:$0xff]  ;;  %v78_v62 = vld [vmem:[#allocation3 + $0x40] sm:$0xff] }
  0x45   :  { %1035 = vmatpush3.bf16.msra.mxu1 %v1034_v25  ;;  %1005 = vmatprep.subr.bf16.mxu0 %v1004_v26  ;;  %v250_v0 = vld [vmem:[#allocation6 + $0x3a0] sm:$0xff]  ;;  %v251_v1 = vld [vmem:[#allocation6 + $0x3a8] sm:$0xff]  ;;  %v80_v2 = vld [vmem:[#allocation3 + $0x50] sm:$0xff]  ;;  %v1078_v7 = vpack.c.bf16 %v233_v59, %v232_v57  ;;  %v1048_v8 = vpack.c.bf16 %v219_v61, %v218_v60 }
  0x46   :  { %1037 = vmatprep.subr.bf16.mxu1 %v1036_v30  ;;  %v202_v3 = vld [vmem:[#allocation6 + $0x220] sm:$0xff]  ;;  %v203_v4 = vld [vmem:[#allocation6 + $0x228] sm:$0xff]  ;;  %v89_v6 = vld [vmem:[#allocation3 + $0x98] sm:$0xff]  ;;  %v1080_v10 = vpack.c.bf16 %v251_v1, %v250_v0 }
  0x47   :  { %v87_v5 = vld [vmem:[#allocation3 + $0x88] sm:$0xff]  ;;  %v234_v9 = vld [vmem:[#allocation6 + $0x320] sm:$0xff]  ;;  %v220_v12 = vld [vmem:[#allocation6 + $0x2b0] sm:$0xff]  ;;  %v1050_v15 = vpack.c.bf16 %v203_v4, %v202_v3 }
  0x48   :  { %1007 = vmatpush3.bf16.msra.mxu0 %v1006_v36  ;;  %v235_v11 = vld [vmem:[#allocation6 + $0x328] sm:$0xff]  ;;  %v221_v13 = vld [vmem:[#allocation6 + $0x2b8] sm:$0xff]  ;;  %v86_v14 = vld [vmem:[#allocation3 + $0x80] sm:$0xff] }
  0x49   :  { %1039 = vmatpush3.bf16.msra.mxu1 %v1038_v37  ;;  %1041 = vmatprep.subr.bf16.mxu0 %v1040_v38  ;;  %v252_v16 = vld [vmem:[#allocation6 + $0x3b0] sm:$0xff]  ;;  %v253_v17 = vld [vmem:[#allocation6 + $0x3b8] sm:$0xff]  ;;  %v95_v21 = vld [vmem:[#allocation3 + $0xc8] sm:$0xff]  ;;  %v1082_v23 = vpack.c.bf16 %v235_v11, %v234_v9  ;;  %v1052_v24 = vpack.c.bf16 %v221_v13, %v220_v12 }
  0x4a   :  { %1073 = vmatprep.subr.bf16.mxu1 %v1072_v41  ;;  %v88_v18 = vld [vmem:[#allocation3 + $0x90] sm:$0xff]  ;;  %v205_v20 = vld [vmem:[#allocation6 + $0x238] sm:$0xff]  ;;  %v1084_v26 = vpack.c.bf16 %v253_v17, %v252_v16  ;;  %v222_v28 = vld [vmem:[#allocation6 + $0x2c0] sm:$0xff] }
  0x4b   :  { %327 = vmatmul.mubr.f32.vlgmr.msra.gmra.mrb[0].mxu0 %v70_v46  ;;  %v204_v19 = vld [vmem:[#allocation6 + $0x230] sm:$0xff]  ;;  %v97_v22 = vld [vmem:[#allocation3 + $0xd8] sm:$0xff]  ;;  %v223_v29 = vld [vmem:[#allocation6 + $0x2c8] sm:$0xff] }
  0x4c   :  { %432 = vmatmul.mubr.f32.vlgmr.msra.gmra.mrb[0].mxu1 %v72_v50  ;;  %1043 = vmatpush3.bf16.msra.mxu0 %v1042_v47  ;;  %v236_v25 = vld [vmem:[#allocation6 + $0x330] sm:$0xff]  ;;  %v237_v27 = vld [vmem:[#allocation6 + $0x338] sm:$0xff]  ;;  %v94_v30 = vld [vmem:[#allocation3 + $0xc0] sm:$0xff]  ;;  %v1054_v31 = vpack.c.bf16 %v205_v20, %v204_v19  ;;  %v1056_v40 = vpack.c.bf16 %v223_v29, %v222_v28 }
  0x4d   :  { %331 = vmatprep.mubr.f32.mxu0 %v79_v53  ;;  %436 = vmatprep.mubr.f32.mxu1 %v81_v54  ;;  %v254_v32 = vld [vmem:[#allocation6 + $0x3c0] sm:$0xff]  ;;  %v255_v33 = vld [vmem:[#allocation6 + $0x3c8] sm:$0xff]  ;;  %v96_v34 = vld [vmem:[#allocation3 + $0xd0] sm:$0xff]  ;;  %v1086_v39 = vpack.c.bf16 %v237_v27, %v236_v25 }
  0x4e   :  { %1075 = vmatpush3.bf16.msra.mxu1 %v1074_v55  ;;  %1045 = vmatprep.subr.bf16.mxu0 %v1044_v56  ;;  %v206_v35 = vld [vmem:[#allocation6 + $0x240] sm:$0xff]  ;;  %v207_v36 = vld [vmem:[#allocation6 + $0x248] sm:$0xff]  ;;  %v105_v38 = vld [vmem:[#allocation3 + $0x118] sm:$0xff]  ;;  %v1088_v42 = vpack.c.bf16 %v255_v33, %v254_v32 }
  0x4f   :  { %332 = vmatmul.mubr.f32.gmra.mrb[2].mxu0 %v78_v62  ;;  %1077 = vmatprep.subr.bf16.mxu1 %v1076_v58  ;;  %v103_v37 = vld [vmem:[#allocation3 + $0x108] sm:$0xff]  ;;  %v238_v41 = vld [vmem:[#allocation6 + $0x340] sm:$0xff]  ;;  %v224_v44 = vld [vmem:[#allocation6 + $0x2d0] sm:$0xff]  ;;  %v1058_v47 = vpack.c.bf16 %v207_v36, %v206_v35 }
  0x50   :  { %437 = vmatmul.mubr.f32.gmra.mrb[2].mxu1 %v80_v2  ;;  %1047 = vmatpush3.bf16.msra.mxu0 %v1046_v63  ;;  %v239_v43 = vld [vmem:[#allocation6 + $0x348] sm:$0xff]  ;;  %v225_v45 = vld [vmem:[#allocation6 + $0x2d8] sm:$0xff]  ;;  %v102_v46 = vld [vmem:[#allocation3 + $0x100] sm:$0xff] }
  0x51   :  { %336 = vmatprep.mubr.f32.mxu0 %v87_v5  ;;  %441 = vmatprep.mubr.f32.mxu1 %v89_v6  ;;  %v256_v48 = vld [vmem:[#allocation6 + $0x3d0] sm:$0xff]  ;;  %v257_v49 = vld [vmem:[#allocation6 + $0x3d8] sm:$0xff]  ;;  %v111_v53 = vld [vmem:[#allocation3 + $0x148] sm:$0xff]  ;;  %v1090_v55 = vpack.c.bf16 %v239_v43, %v238_v41  ;;  %v1060_v56 = vpack.c.bf16 %v225_v45, %v224_v44 }
  0x52   :  { %1079 = vmatpush3.bf16.msra.mxu1 %v1078_v7  ;;  %1049 = vmatprep.subr.bf16.mxu0 %v1048_v8  ;;  %v104_v50 = vld [vmem:[#allocation3 + $0x110] sm:$0xff]  ;;  %v209_v52 = vld [vmem:[#allocation6 + $0x258] sm:$0xff]  ;;  %v1092_v58 = vpack.c.bf16 %v257_v49, %v256_v48  ;;  %v226_v60 = vld [vmem:[#allocation6 + $0x2e0] sm:$0xff] }
  0x53   :  { %337 = vmatmul.mubr.f32.gmra.mrb[4].mxu0 %v86_v14  ;;  %1081 = vmatprep.subr.bf16.mxu1 %v1080_v10  ;;  %v208_v51 = vld [vmem:[#allocation6 + $0x250] sm:$0xff]  ;;  %v113_v54 = vld [vmem:[#allocation3 + $0x158] sm:$0xff]  ;;  %v227_v61 = vld [vmem:[#allocation6 + $0x2e8] sm:$0xff] }
  0x54   :  { %442 = vmatmul.mubr.f32.gmra.mrb[4].mxu1 %v88_v18  ;;  %1051 = vmatpush3.bf16.msra.mxu0 %v1050_v15  ;;  %v240_v57 = vld [vmem:[#allocation6 + $0x350] sm:$0xff]  ;;  %v241_v59 = vld [vmem:[#allocation6 + $0x358] sm:$0xff]  ;;  %v110_v62 = vld [vmem:[#allocation3 + $0x140] sm:$0xff]  ;;  %v1062_v63 = vpack.c.bf16 %v209_v52, %v208_v51  ;;  %v1064_v8 = vpack.c.bf16 %v227_v61, %v226_v60 }
  0x55   :  { %341 = vmatprep.mubr.f32.mxu0 %v95_v21  ;;  %446 = vmatprep.mubr.f32.mxu1 %v97_v22  ;;  %v258_v0 = vld [vmem:[#allocation6 + $0x3e0] sm:$0xff]  ;;  %v259_v1 = vld [vmem:[#allocation6 + $0x3e8] sm:$0xff]  ;;  %v112_v2 = vld [vmem:[#allocation3 + $0x150] sm:$0xff]  ;;  %v1094_v7 = vpack.c.bf16 %v241_v59, %v240_v57 }
  0x56   :  { %1083 = vmatpush3.bf16.msra.mxu1 %v1082_v23  ;;  %1053 = vmatprep.subr.bf16.mxu0 %v1052_v24  ;;  %v210_v3 = vld [vmem:[#allocation6 + $0x260] sm:$0xff]  ;;  %v211_v4 = vld [vmem:[#allocation6 + $0x268] sm:$0xff]  ;;  %v121_v6 = vld [vmem:[#allocation3 + $0x198] sm:$0xff]  ;;  %v1096_v10 = vpack.c.bf16 %v259_v1, %v258_v0 }
  0x57   :  { %342 = vmatmul.mubr.f32.gmra.mrb[6].mxu0 %v94_v30  ;;  %1085 = vmatprep.subr.bf16.mxu1 %v1084_v26  ;;  %v119_v5 = vld [vmem:[#allocation3 + $0x188] sm:$0xff]  ;;  %v242_v9 = vld [vmem:[#allocation6 + $0x360] sm:$0xff]  ;;  %v228_v12 = vld [vmem:[#allocation6 + $0x2f0] sm:$0xff]  ;;  %v1066_v15 = vpack.c.bf16 %v211_v4, %v210_v3 }
  0x58   :  { %447 = vmatmul.mubr.f32.gmra.mrb[6].mxu1 %v96_v34  ;;  %1055 = vmatpush3.bf16.msra.mxu0 %v1054_v31  ;;  %v243_v11 = vld [vmem:[#allocation6 + $0x368] sm:$0xff]  ;;  %v229_v13 = vld [vmem:[#allocation6 + $0x2f8] sm:$0xff]  ;;  %v118_v14 = vld [vmem:[#allocation3 + $0x180] sm:$0xff] }
  0x59   :  { %346 = vmatprep.mubr.f32.mxu0 %v103_v37  ;;  %451 = vmatprep.mubr.f32.mxu1 %v105_v38  ;;  %v260_v16 = vld [vmem:[#allocation6 + $0x3f0] sm:$0xff]  ;;  %v261_v17 = vld [vmem:[#allocation6 + $0x3f8] sm:$0xff]  ;;  %v127_v21 = vld [vmem:[#allocation3 + $0x1c8] sm:$0xff]  ;;  %v1098_v23 = vpack.c.bf16 %v243_v11, %v242_v9  ;;  %v1068_v24 = vpack.c.bf16 %v229_v13, %v228_v12 }
  0x5a   :  { %1087 = vmatpush3.bf16.msra.mxu1 %v1086_v39  ;;  %1057 = vmatprep.subr.bf16.mxu0 %v1056_v40  ;;  %v120_v18 = vld [vmem:[#allocation3 + $0x190] sm:$0xff]  ;;  %v213_v20 = vld [vmem:[#allocation6 + $0x278] sm:$0xff]  ;;  %v1100_v25 = vpack.c.bf16 %v261_v17, %v260_v16  ;;  %v126_v28 = vld [vmem:[#allocation3 + $0x1c0] sm:$0xff] }
  0x5b   :  { %347 = vmatmul.mubr.f32.gmra.mrb[8].mxu0 %v102_v46  ;;  %1089 = vmatprep.subr.bf16.mxu1 %v1088_v42  ;;  %v212_v19 = vld [vmem:[#allocation6 + $0x270] sm:$0xff]  ;;  %v129_v22 = vld [vmem:[#allocation3 + $0x1d8] sm:$0xff]  ;;  %v75_v31 = vld [vmem:[#allocation3 + $0x28] sm:$0xff] }
  0x5c   :  { %452 = vmatmul.mubr.f32.gmra.mrb[8].mxu1 %v104_v50  ;;  %1059 = vmatpush3.bf16.msra.mxu0 %v1058_v47  ;;  %v244_v26 = vld [vmem:[#allocation6 + $0x370] sm:$0xff]  ;;  %v245_v27 = vld [vmem:[#allocation6 + $0x378] sm:$0xff]  ;;  %v1070_v29 = vpack.c.bf16 %v213_v20, %v212_v19  ;;  %v74_v34 = vld [vmem:[#allocation3 + $0x20] sm:$0xff] }
  0x5d   :  { %351 = vmatprep.mubr.f32.mxu0 %v111_v53  ;;  %456 = vmatprep.mubr.f32.mxu1 %v113_v54  ;;  %v128_v30 = vld [vmem:[#allocation3 + $0x1d0] sm:$0xff]  ;;  %v1102_v32 = vpack.c.bf16 %v245_v27, %v244_v26  ;;  %v77_v33 = vld [vmem:[#allocation3 + $0x38] sm:$0xff]  ;;  %v83_v35 = vld [vmem:[#allocation3 + $0x68] sm:$0xff] }
  0x5e   :  { %1091 = vmatpush3.bf16.msra.mxu1 %v1090_v55  ;;  %1061 = vmatprep.subr.bf16.mxu0 %v1060_v56  ;;  %v76_v36 = vld [vmem:[#allocation3 + $0x30] sm:$0xff]  ;;  %v85_v37 = vld [vmem:[#allocation3 + $0x78] sm:$0xff]  ;;  %v82_v38 = vld [vmem:[#allocation3 + $0x60] sm:$0xff] }
  0x5f   :  { %352 = vmatmul.mubr.f32.gmra.mrb[10].mxu0 %v110_v62  ;;  %1093 = vmatprep.subr.bf16.mxu1 %v1092_v58  ;;  %v91_v39 = vld [vmem:[#allocation3 + $0xa8] sm:$0xff]  ;;  %v84_v40 = vld [vmem:[#allocation3 + $0x70] sm:$0xff]  ;;  %v93_v41 = vld [vmem:[#allocation3 + $0xb8] sm:$0xff] }
  0x60   :  { %457 = vmatmul.mubr.f32.gmra.mrb[10].mxu1 %v112_v2  ;;  %1063 = vmatpush3.bf16.msra.mxu0 %v1062_v63  ;;  %v90_v42 = vld [vmem:[#allocation3 + $0xa0] sm:$0xff]  ;;  %v99_v43 = vld [vmem:[#allocation3 + $0xe8] sm:$0xff]  ;;  %v92_v44 = vld [vmem:[#allocation3 + $0xb0] sm:$0xff] }
  0x61   :  { %356 = vmatprep.mubr.f32.mxu0 %v119_v5  ;;  %461 = vmatprep.mubr.f32.mxu1 %v121_v6  ;;  %v101_v45 = vld [vmem:[#allocation3 + $0xf8] sm:$0xff]  ;;  %v98_v46 = vld [vmem:[#allocation3 + $0xe0] sm:$0xff]  ;;  %v107_v47 = vld [vmem:[#allocation3 + $0x128] sm:$0xff] }
  0x62   :  { %1095 = vmatpush3.bf16.msra.mxu1 %v1094_v7  ;;  %1065 = vmatprep.subr.bf16.mxu0 %v1064_v8  ;;  %v100_v48 = vld [vmem:[#allocation3 + $0xf0] sm:$0xff]  ;;  %v109_v49 = vld [vmem:[#allocation3 + $0x138] sm:$0xff]  ;;  %v106_v50 = vld [vmem:[#allocation3 + $0x120] sm:$0xff] }
  0x63   :  { %357 = vmatmul.mubr.f32.gmra.mrb[12].mxu0 %v118_v14  ;;  %1097 = vmatprep.subr.bf16.mxu1 %v1096_v10  ;;  %v115_v51 = vld [vmem:[#allocation3 + $0x168] sm:$0xff]  ;;  %v108_v52 = vld [vmem:[#allocation3 + $0x130] sm:$0xff]  ;;  %v117_v53 = vld [vmem:[#allocation3 + $0x178] sm:$0xff] }
  0x64   :  { %462 = vmatmul.mubr.f32.gmra.mrb[12].mxu1 %v120_v18  ;;  %1067 = vmatpush3.bf16.msra.mxu0 %v1066_v15  ;;  %v114_v54 = vld [vmem:[#allocation3 + $0x160] sm:$0xff]  ;;  %v123_v55 = vld [vmem:[#allocation3 + $0x1a8] sm:$0xff]  ;;  %v116_v56 = vld [vmem:[#allocation3 + $0x170] sm:$0xff] }
  0x65   :  { %361 = vmatprep.mubr.f32.mxu0 %v127_v21  ;;  %466 = vmatprep.mubr.f32.mxu1 %v129_v22  ;;  %v125_v57 = vld [vmem:[#allocation3 + $0x1b8] sm:$0xff]  ;;  %v122_v58 = vld [vmem:[#allocation3 + $0x1a0] sm:$0xff]  ;;  %v131_v59 = vld [vmem:[#allocation3 + $0x1e8] sm:$0xff] }
  0x66   :  { %1099 = vmatpush3.bf16.msra.mxu1 %v1098_v23  ;;  %1069 = vmatprep.subr.bf16.mxu0 %v1068_v24  ;;  %v124_v60 = vld [vmem:[#allocation3 + $0x1b0] sm:$0xff]  ;;  %v133_v61 = vld [vmem:[#allocation3 + $0x1f8] sm:$0xff]  ;;  %v130_v62 = vld [vmem:[#allocation3 + $0x1e0] sm:$0xff] }
  0x67   :  { %362 = vmatmul.mubr.f32.gmra.mrb[14].mxu0 %v126_v28  ;;  %1101 = vmatprep.subr.bf16.mxu1 %v1100_v25  ;;  %v132_v63 = vld [vmem:[#allocation3 + $0x1f0] sm:$0xff] }
  0x68   :  { %467 = vmatmul.mubr.f32.gmra.mrb[14].mxu1 %v128_v30  ;;  %1071 = vmatpush3.bf16.msra.mxu0 %v1070_v29 }
  0x69   :  { %536 = vmatprep.mubr.f32.mxu0 %v75_v31  ;;  %641 = vmatprep.mubr.f32.mxu1 %v77_v33 }
  0x6a   :  { %1103 = vmatpush3.bf16.msra.mxu1 %v1102_v32 }
  0x6b   :  { %537 = vmatmul.mubr.f32.vlgmr.msra.gmra.mrb[16].mxu0 %v74_v34 }
  0x6c   :  { %541 = vmatprep.mubr.f32.mxu0 %v83_v35 }
  0x6d   :  { %642 = vmatmul.mubr.f32.vlgmr.msra.gmra.mrb[16].mxu1 %v76_v36 }
  0x6e   :  { %646 = vmatprep.mubr.f32.mxu1 %v85_v37 }
  0x6f   :  { %542 = vmatmul.mubr.f32.gmra.mrb[18].mxu0 %v82_v38 }
  0x70   :  { %546 = vmatprep.mubr.f32.mxu0 %v91_v39 }
  0x71   :  { %647 = vmatmul.mubr.f32.gmra.mrb[18].mxu1 %v84_v40 }
  0x72   :  { %651 = vmatprep.mubr.f32.mxu1 %v93_v41 }
  0x73   :  { %547 = vmatmul.mubr.f32.gmra.mrb[20].mxu0 %v90_v42 }
  0x74   :  { %551 = vmatprep.mubr.f32.mxu0 %v99_v43 }
  0x75   :  { %652 = vmatmul.mubr.f32.gmra.mrb[20].mxu1 %v92_v44 }
  0x76   :  { %656 = vmatprep.mubr.f32.mxu1 %v101_v45 }
  0x77   :  { %552 = vmatmul.mubr.f32.gmra.mrb[22].mxu0 %v98_v46 }
  0x78   :  { %556 = vmatprep.mubr.f32.mxu0 %v107_v47 }
  0x79   :  { %657 = vmatmul.mubr.f32.gmra.mrb[22].mxu1 %v100_v48 }
  0x7a   :  { %661 = vmatprep.mubr.f32.mxu1 %v109_v49 }
  0x7b   :  { %557 = vmatmul.mubr.f32.gmra.mrb[24].mxu0 %v106_v50 }
  0x7c   :  { %561 = vmatprep.mubr.f32.mxu0 %v115_v51 }
  0x7d   :  { %662 = vmatmul.mubr.f32.gmra.mrb[24].mxu1 %v108_v52 }
  0x7e   :  { %666 = vmatprep.mubr.f32.mxu1 %v117_v53 }
  0x7f   :  { %562 = vmatmul.mubr.f32.gmra.mrb[26].mxu0 %v114_v54 }
  0x80   :  { %566 = vmatprep.mubr.f32.mxu0 %v123_v55 }
  0x81   :  { %667 = vmatmul.mubr.f32.gmra.mrb[26].mxu1 %v116_v56 }
  0x82   :  { %671 = vmatprep.mubr.f32.mxu1 %v125_v57 }
  0x83   :  { %567 = vmatmul.mubr.f32.gmra.mrb[28].mxu0 %v122_v58 }
  0x84   :  { %571 = vmatprep.mubr.f32.mxu0 %v131_v59 }
  0x85   :  { %672 = vmatmul.mubr.f32.gmra.mrb[28].mxu1 %v124_v60 }
  0x86   :  { %676 = vmatprep.mubr.f32.mxu1 %v133_v61 }
  0x87   :  { %572 = vmatmul.mubr.f32.gmra.mrb[30].mxu0 %v130_v62 }
  0x89   :  { %677 = vmatmul.mubr.f32.gmra.mrb[30].mxu1 %v132_v63 }
 0x11e   :  { %v784_v0 = vpop.f32.mrb[0].mxu0 }
 0x11f   :  { %v840_v1 = vpop.f32.mrb[0].mxu1  ;;  %v785_v2 = vpop.f32.mrb[1].mxu0 }
 0x120   :  { %v786_v3 = vadd.f32 %v785_v2, %v784_v0  ;;  %v841_v4 = vpop.f32.mrb[1].mxu1  ;;  %v1254_v0 = vld [vmem:[%s1295_s2] ss:$0 sm:$0xff]  ;;  %s1191_s2 = smov [#allocation8]  }
 0x121   :  { %v842_v5 = vadd.f32 %v841_v4, %v840_v1  ;;  %s738_s13 = sshll.u32 %s1191_s2, 4  ;;  %s739_s13 = int_to_ptr.vmem [resolvable:$true] %s738_s13 }
 0x122   :  { %v787_v6 = vpop.f32.mrb[2].mxu0  ;;  %s1156_s14 = scalar_lea.vmem %s739_s13, 1024  ;;  %p1161_p3 = scmp.lt.s32.totalorder %s739_s13, %s739_s13 }
 0x123   :  { %v434_v7 = vadd.f32 %v842_v5, %v786_v3  ;;  %v843_v8 = vpop.f32.mrb[2].mxu1  ;;  %v788_v9 = vpop.f32.mrb[3].mxu0  ;;  %p1157_p2 = scmp.ne.s32.totalorder %s739_s13, %s1156_s14  ;;  %p1162_p4 = scmp.lt.s32.totalorder %s1156_s14, %s1156_s14 }
 0x124   :  { %v789_v10 = vadd.f32 %v788_v9, %v787_v6  ;;  %v844_v11 = vpop.f32.mrb[3].mxu1 }
 0x125   :  { %v845_v12 = vadd.f32 %v844_v11, %v843_v8  ;;  %p1163_p5 = por %p1162_p4, %p1161_p3 }
 0x126   :  { %v790_v13 = vpop.f32.mrb[4].mxu0 }
 0x127   :  { %v439_v14 = vadd.f32 %v845_v12, %v789_v10  ;;  %v846_v15 = vpop.f32.mrb[4].mxu1  ;;  %v791_v16 = vpop.f32.mrb[5].mxu0  ;;  %p1164_p6 = pnand %p1163_p5, %p1157_p2 }
 0x128   :  { %v792_v17 = vadd.f32 %v791_v16, %v790_v13  ;;  %v847_v18 = vpop.f32.mrb[5].mxu1 }
 0x129   :  { %v848_v19 = vadd.f32 %v847_v18, %v846_v15  ;;  %v1190_v15 = vmov 0.0  }
 0x12a   :  { %v793_v20 = vpop.f32.mrb[6].mxu0 }
 0x12b   :  { %v1239_v21 = vadd.f32 %v848_v19, %v792_v17  ;;  %v849_v22 = vpop.f32.mrb[6].mxu1  ;;  %v794_v23 = vpop.f32.mrb[7].mxu0 }
 0x12c   :  { %v795_v24 = vadd.f32 %v794_v23, %v793_v20  ;;  %v850_v25 = vpop.f32.mrb[7].mxu1 }
 0x12d   :  { %v851_v26 = vadd.f32 %v850_v25, %v849_v22 }
 0x12e   :  { %v796_v27 = vpop.f32.mrb[8].mxu0 }
 0x12f   :  { %v1241_v28 = vadd.f32 %v851_v26, %v795_v24  ;;  %v852_v29 = vpop.f32.mrb[8].mxu1  ;;  %v797_v30 = vpop.f32.mrb[9].mxu0 }
 0x130   :  { %v798_v31 = vadd.f32 %v797_v30, %v796_v27  ;;  %v853_v32 = vpop.f32.mrb[9].mxu1 }
 0x131   :  { %v854_v33 = vadd.f32 %v853_v32, %v852_v29 }
 0x132   :  { %v799_v34 = vpop.f32.mrb[10].mxu0 }
 0x133   :  { %v1243_v35 = vadd.f32 %v854_v33, %v798_v31  ;;  %v855_v36 = vpop.f32.mrb[10].mxu1  ;;  %v800_v37 = vpop.f32.mrb[11].mxu0 }
 0x134   :  { %v801_v38 = vadd.f32 %v800_v37, %v799_v34  ;;  %v856_v39 = vpop.f32.mrb[11].mxu1 }
 0x135   :  { %v857_v40 = vadd.f32 %v856_v39, %v855_v36 }
 0x136   :  { %v802_v41 = vpop.f32.mrb[12].mxu0 }
 0x137   :  { %v1245_v42 = vadd.f32 %v857_v40, %v801_v38  ;;  %v858_v43 = vpop.f32.mrb[12].mxu1  ;;  %v803_v44 = vpop.f32.mrb[13].mxu0 }
 0x138   :  { %v804_v45 = vadd.f32 %v803_v44, %v802_v41  ;;  %v859_v46 = vpop.f32.mrb[13].mxu1 }
 0x139   :  { %v860_v47 = vadd.f32 %v859_v46, %v858_v43 }
 0x13a   :  { %v805_v48 = vpop.f32.mrb[14].mxu0 }
 0x13b   :  { %v1247_v49 = vadd.f32 %v860_v47, %v804_v45  ;;  %v861_v50 = vpop.f32.mrb[14].mxu1  ;;  %v806_v51 = vpop.f32.mrb[15].mxu0 }
 0x13c   :  { %v807_v52 = vadd.f32 %v806_v51, %v805_v48  ;;  %v862_v53 = vpop.f32.mrb[15].mxu1 }
 0x13d   :  { %v863_v54 = vadd.f32 %v862_v53, %v861_v50 }
 0x13e   :  { %v896_v55 = vpop.f32.mrb[16].mxu0 }
 0x13f   :  { %v1249_v56 = vadd.f32 %v863_v54, %v807_v52  ;;  %v897_v57 = vpop.f32.mrb[17].mxu0 }
 0x140   :  { %v898_v58 = vadd.f32 %v897_v57, %v896_v55  ;;  %v952_v59 = vpop.f32.mrb[16].mxu1 }
 0x141   :  { %v953_v60 = vpop.f32.mrb[17].mxu1 }
 0x142   :  { %v539_v61 = vadd.f32 %v898_v58, %v434_v7  ;;  %v954_v62 = vadd.f32 %v953_v60, %v952_v59  ;;  %v899_v63 = vpop.f32.mrb[18].mxu0 }
 0x143   :  { %v900_v1 = vpop.f32.mrb[19].mxu0 }
 0x144   :  { %v644_v2 = vadd.f32 %v954_v62, %v539_v61  ;;  %v901_v3 = vadd.f32 %v900_v1, %v899_v63  ;;  %v955_v4 = vpop.f32.mrb[18].mxu1 }
 0x145   :  { %v956_v5 = vpop.f32.mrb[19].mxu1 }
 0x146   :  { %v682_v6 = vadd.f32 %v1254_v0, %v644_v2  ;;  %v544_v8 = vadd.f32 %v901_v3, %v439_v14  ;;  %v957_v9 = vadd.f32 %v956_v5, %v955_v4  ;;  %v902_v10 = vpop.f32.mrb[20].mxu0 }
 0x147   :  { %v903_v11 = vpop.f32.mrb[21].mxu0 }
 0x148   :  { %vm709_vm0 = vcmp.gt.f32.partialorder %v682_v6, 0.5  ;;  %v649_v7 = vadd.f32 %v957_v9, %v544_v8  ;;  %v904_v12 = vadd.f32 %v903_v11, %v902_v10  ;;  %v958_v13 = vpop.f32.mrb[20].mxu1 }
 0x149   :  { %v717_v16 = vsel %vm709_vm0, 1.0, %v1190_v15  ;;  %v959_v17 = vpop.f32.mrb[21].mxu1 }
 0x14a   :  { %725 = vst [vmem:[#allocation8] sm:$0xff] %v717_v16  ;;  %v683_v18 = vadd.f32 %v1254_v0, %v649_v7  ;;  %v549_v19 = vadd.f32 %v904_v12, %v1239_v21  ;;  %v960_v20 = vadd.f32 %v959_v17, %v958_v13  ;;  %v905_v22 = vpop.f32.mrb[22].mxu0 }
 0x14b   :  { %v906_v23 = vpop.f32.mrb[23].mxu0 }
 0x14c   :  { %vm710_vm1 = vcmp.gt.f32.partialorder %v683_v18, 0.5  ;;  %v654_v14 = vadd.f32 %v960_v20, %v549_v19  ;;  %v907_v24 = vadd.f32 %v906_v23, %v905_v22  ;;  %v961_v25 = vpop.f32.mrb[22].mxu1 }
 0x14d   :  { %v718_v26 = vsel %vm710_vm1, 1.0, %v1190_v15  ;;  %v962_v27 = vpop.f32.mrb[23].mxu1 }
 0x14e   :  { %726 = vst [vmem:[#allocation8 + $0x8] sm:$0xff] %v718_v26  ;;  %v684_v29 = vadd.f32 %v1254_v0, %v654_v14  ;;  %v554_v30 = vadd.f32 %v907_v24, %v1241_v28  ;;  %v963_v31 = vadd.f32 %v962_v27, %v961_v25  ;;  %v908_v32 = vpop.f32.mrb[24].mxu0 }
 0x14f   :  { %v909_v33 = vpop.f32.mrb[25].mxu0 }
 0x150   :  { %vm711_vm2 = vcmp.gt.f32.partialorder %v684_v29, 0.5  ;;  %v659_v21 = vadd.f32 %v963_v31, %v554_v30  ;;  %v910_v34 = vadd.f32 %v909_v33, %v908_v32  ;;  %v964_v36 = vpop.f32.mrb[24].mxu1 }
 0x151   :  { %v719_v37 = vsel %vm711_vm2, 1.0, %v1190_v15  ;;  %v965_v38 = vpop.f32.mrb[25].mxu1 }
 0x152   :  { %727 = vst [vmem:[#allocation8 + $0x10] sm:$0xff] %v719_v37  ;;  %v685_v39 = vadd.f32 %v1254_v0, %v659_v21  ;;  %v559_v40 = vadd.f32 %v910_v34, %v1243_v35  ;;  %v966_v41 = vadd.f32 %v965_v38, %v964_v36  ;;  %v911_v43 = vpop.f32.mrb[26].mxu0 }
 0x153   :  { %v912_v44 = vpop.f32.mrb[27].mxu0 }
 0x154   :  { %vm712_vm3 = vcmp.gt.f32.partialorder %v685_v39, 0.5  ;;  %v664_v28 = vadd.f32 %v966_v41, %v559_v40  ;;  %v913_v45 = vadd.f32 %v912_v44, %v911_v43  ;;  %v967_v46 = vpop.f32.mrb[26].mxu1 }
 0x155   :  { %v720_v47 = vsel %vm712_vm3, 1.0, %v1190_v15  ;;  %v968_v48 = vpop.f32.mrb[27].mxu1 }
 0x156   :  { %728 = vst [vmem:[#allocation8 + $0x18] sm:$0xff] %v720_v47  ;;  %v686_v50 = vadd.f32 %v1254_v0, %v664_v28  ;;  %v564_v51 = vadd.f32 %v913_v45, %v1245_v42  ;;  %v969_v52 = vadd.f32 %v968_v48, %v967_v46  ;;  %v914_v53 = vpop.f32.mrb[28].mxu0 }
 0x157   :  { %v915_v54 = vpop.f32.mrb[29].mxu0 }
 0x158   :  { %vm713_vm4 = vcmp.gt.f32.partialorder %v686_v50, 0.5  ;;  %v669_v35 = vadd.f32 %v969_v52, %v564_v51  ;;  %v916_v55 = vadd.f32 %v915_v54, %v914_v53  ;;  %v970_v57 = vpop.f32.mrb[28].mxu1 }
 0x159   :  { %v721_v58 = vsel %vm713_vm4, 1.0, %v1190_v15  ;;  %v971_v59 = vpop.f32.mrb[29].mxu1 }
 0x15a   :  { %729 = vst [vmem:[#allocation8 + $0x20] sm:$0xff] %v721_v58  ;;  %v687_v60 = vadd.f32 %v1254_v0, %v669_v35  ;;  %v569_v61 = vadd.f32 %v916_v55, %v1247_v49  ;;  %v972_v62 = vadd.f32 %v971_v59, %v970_v57  ;;  %v917_v63 = vpop.f32.mrb[30].mxu0 }
 0x15b   :  { %v918_v1 = vpop.f32.mrb[31].mxu0 }
 0x15c   :  { %vm714_vm5 = vcmp.gt.f32.partialorder %v687_v60, 0.5  ;;  %v674_v42 = vadd.f32 %v972_v62, %v569_v61  ;;  %v919_v2 = vadd.f32 %v918_v1, %v917_v63  ;;  %v973_v3 = vpop.f32.mrb[30].mxu1 }
 0x15d   :  { %v722_v4 = vsel %vm714_vm5, 1.0, %v1190_v15  ;;  %v974_v5 = vpop.f32.mrb[31].mxu1 }
 0x15e   :  { %730 = vst [vmem:[#allocation8 + $0x28] sm:$0xff] %v722_v4  ;;  %v688_v6 = vadd.f32 %v1254_v0, %v674_v42  ;;  %v574_v8 = vadd.f32 %v919_v2, %v1249_v56  ;;  %v975_v9 = vadd.f32 %v974_v5, %v973_v3 }
 0x160   :  { %vm715_vm6 = vcmp.gt.f32.partialorder %v688_v6, 0.5  ;;  %v679_v10 = vadd.f32 %v975_v9, %v574_v8 }
 0x161   :  { %v723_v49 = vsel %vm715_vm6, 1.0, %v1190_v15 }
 0x162   :  { %731 = vst [vmem:[#allocation8 + $0x30] sm:$0xff] %v723_v49  ;;  %v689_v11 = vadd.f32 %v1254_v0, %v679_v10 }
 0x164   :  { %vm716_vm7 = vcmp.gt.f32.partialorder %v689_v11, 0.5 }
 0x165   :  { %v724_v7 = vsel %vm716_vm7, 1.0, %v1190_v15 }
 0x166   :  { %732 = vst [vmem:[#allocation8 + $0x38] sm:$0xff] %v724_v7 }
 0x167   :  { %1167 = shalt.err (!%p1164_p6)
}
 0x168   :  { %s1168_s17 = scalar_lea.hbm %s1296_s3, 1024 }
 0x169   :  { %p1169_p7 = scmp.ne.s32.totalorder %s1296_s3, %s1168_s17  ;;  %p1172_p8 = scmp.lt.u32.totalorder %s1168_s17, %s1296_s3 }
 0x16b   :  { %p1174_p9 = pnand %p1172_p8, %p1169_p7 }
 0x16d   :  { %1177 = shalt.err (!%p1174_p9)
}
 0x16e   :  { %744 = dma.vmem_to_hbm [thread:$0]  %s739_s13, 1024, %s1296_s3, [#allocation5], %s1188_s0, %s1188_s0, %s1189_s9  }
 0x16f   :  { %1182 = dma.done.wait [#allocation5], 1024  }
 0x170   :  { %1183 = vsyncadd [#allocation5], 4294966272 }
 0x171   :  { %748 = vsyncpa [#allocation4], 1 }
 0x172   :  { %749 = vsyncpa [#allocation7], 1 }
 0x173   :  { %750 = vsyncpa [#allocation5], 1 }

</bundles_post_ra>
